<compile_context>
chip_gen: v5e
topology: v5e:2x2
jax: 0.10.0
libtpu: 0.0.40
codegen_flags: <defaults>
</compile_context>

<pallas_src>
import functools
import math

import jax
import jax.numpy as jnp
from jax.experimental import pallas as pl
from jax.experimental.pallas import tpu as pltpu


# ---------------------------------------------------------------------------
# Deterministic parameter init (mirrors _smooth_mapping_matrix in PyTorch)
# ---------------------------------------------------------------------------
def smooth_mapping_matrix(shape):
    """shape = (l, h).  Returns the mapping matrix of shape (h, l) if l < h,
    or eye(l) if l == h — exactly like the torch reference."""
    l, h = shape
    if l < h:
        up_rate = h / l
        i = jnp.arange(l, dtype=jnp.float32)[:, None]
        j = jnp.arange(h, dtype=jnp.float32)[None, :]
        t = 1.0 / ((i * up_rate - j) ** 2 + 1.0)          # (l, h)
        t = t / jnp.sum(t, axis=0, keepdims=True)         # column-normalize
        return t.T                                         # (h, l)
    elif l == h:
        return jnp.eye(l, dtype=jnp.float32)
    else:
        raise NotImplementedError("yl dim must be <= yh dim")


# ---------------------------------------------------------------------------
# Static operator fold:  W = kron(M0, M1)^T, shape (L0*L1, H0*H1)
#   map_y.reshape(-1) = yl.reshape(-1) @ W
# ---------------------------------------------------------------------------
def make_kron_operator(m0, m1, dtype=jnp.float32):
    """W[l0*L1+l1, h0*H1+h1] = M0[h0,l0] * M1[h1,l1].  Precompute once at
    init (parameters are static); pass via `w=` to skip re-folding per call."""
    H0, L0 = m0.shape
    H1, L1 = m1.shape
    w = jnp.einsum("hl,gm->lmhg", m0, m1)                  # (L0, L1, H0, H1)
    return w.reshape(L0 * L1, H0 * H1).astype(dtype)


# ---------------------------------------------------------------------------
# Kernel: one lane-dense MXU matmul per batch tile
#   out (Bt, N) = yh (Bt, N) - yl (Bt, K) @ W (K, N)
# ---------------------------------------------------------------------------
def _mapping_connection_kernel(yl_ref, w_ref, yh_ref, out_ref, *, mxu_dtype):
    yl = yl_ref[...]
    if yl.dtype != mxu_dtype:
        yl = yl.astype(mxu_dtype)               # activations cast in-kernel;
                                                # W arrives pre-cast (static)
    map_y = jnp.dot(yl, w_ref[...], preferred_element_type=jnp.float32)
    # read-before-write on the aliased yh/out block (safe: single full block)
    out_ref[...] = (yh_ref[...] - map_y).astype(out_ref.dtype)


# ---------------------------------------------------------------------------
# Wrappers
# ---------------------------------------------------------------------------
def mapping_connection_forward_batched(yl, yh, m0, m1, *, w=None, block_b=32,
                                       mxu_dtype=jnp.float32,
                                       core_parallel=False):
    """Batched forward: yl (B, L0, L1), yh (B, H0, H1) -> res (B, H0, H1).

    One pallas_call for all B problems; Bt = min(B, block_b) batch elements
    per grid step (block_b is rounded to a sublane multiple of 8 when tiling).
    `mxu_dtype=jnp.bfloat16` uses the bf16-native MXU path on v5e/v6e/v7x
    (~1e-2 relative error on the map term). `core_parallel=True` marks the
    batch axis CORE_PARALLEL to split it across v7x's two TensorCores.

    yh is aliased to the output; the HBM saving only materializes if the
    caller donates yh (otherwise XLA inserts a defensive copy)."""
    B, L0, L1 = yl.shape
    Bh, H0, H1 = yh.shape
    assert B == Bh
    assert m0.shape == (H0, L0) and m1.shape == (H1, L1)
    K, N = L0 * L1, H0 * H1

    if w is None:
        w = make_kron_operator(m0, m1, dtype=mxu_dtype)
    else:
        assert w.shape == (K, N)
        w = w.astype(mxu_dtype)

    yl_flat = yl.reshape(B, K)
    yh_flat = yh.reshape(B, N)

    # Batch tile: whole batch if small, else a sublane-aligned tile; pad B up.
    if B <= block_b:
        bt = B
    else:
        bt = max(8, (block_b // 8) * 8)
    bp = math.ceil(B / bt) * bt
    if bp != B:
        yl_flat = jnp.pad(yl_flat, ((0, bp - B), (0, 0)))
        yh_flat = jnp.pad(yh_flat, ((0, bp - B), (0, 0)))

    vmem = pltpu.MemorySpace.VMEM
    kernel = functools.partial(_mapping_connection_kernel, mxu_dtype=mxu_dtype)
    batch_sem = pltpu.CORE_PARALLEL if core_parallel else "parallel"

    out_flat = pl.pallas_call(
        kernel,
        out_shape=jax.ShapeDtypeStruct((bp, N), yh.dtype),
        grid=(bp // bt,),
        in_specs=[
            pl.BlockSpec((bt, K), lambda b: (b, 0), memory_space=vmem),
            pl.BlockSpec((K, N), lambda b: (0, 0), memory_space=vmem),
            pl.BlockSpec((bt, N), lambda b: (b, 0), memory_space=vmem),
        ],
        out_specs=pl.BlockSpec((bt, N), lambda b: (b, 0), memory_space=vmem),
        input_output_aliases={2: 0},   # yh buffer reused for res when donated
        cost_estimate=pl.CostEstimate(
            flops=2 * bp * K * N,
            transcendentals=0,
            bytes_accessed=(yl_flat.size * yl_flat.dtype.itemsize
                            + w.size * w.dtype.itemsize
                            + 2 * yh_flat.size * yh_flat.dtype.itemsize)),
        compiler_params=pltpu.CompilerParams(dimension_semantics=(batch_sem,)),
    )(yl_flat, w, yh_flat)

    if bp != B:
        out_flat = out_flat[:B]
    return out_flat.reshape(B, H0, H1)


def mapping_connection_forward(yl, yh, m0, m1, *, w=None, mxu_dtype=jnp.float32):
    """Single-problem forward: res = yh - multi_mode_dot(yl, [m0, m1]).

    At the module's shapes this is launch-overhead bound (the pallas_call
    custom-call + DMA setup dominates ~8 KFLOPs of work): prefer the batched
    entry point when multiple problems are live."""
    res = mapping_connection_forward_batched(yl[None], yh[None], m0, m1,
                                             w=w, mxu_dtype=mxu_dtype)
    return res[0]


# ---------------------------------------------------------------------------
# Pure-JAX reference (tensorly.tenalg.multi_mode_dot for the 2-D case)
# ---------------------------------------------------------------------------
def _reference_forward(yl, yh, m0, m1):
    return yh - m0 @ yl @ m1.T


if __name__ == "__main__":
    # shapes consistent with the module: yl_shape=(8, 16), yh_shape=(16, 32)
    yl_shape = (8, 16)
    yh_shape = (16, 32)

    key = jax.random.PRNGKey(0)
    k1, k2, k3, k4, k5, k6 = jax.random.split(key, 6)
    yl = jax.random.normal(k1, yl_shape, dtype=jnp.float32)
    yh = jax.random.normal(k2, yh_shape, dtype=jnp.float32)

    # deterministic "smooth_mapping_matrix" parameters (same init as __init__)
    m0 = smooth_mapping_matrix((yl_shape[0], yh_shape[0]))  # (H0, L0) = (16, 8)
    m1 = smooth_mapping_matrix((yl_shape[1], yh_shape[1]))  # (H1, L1) = (32, 16)

    # --- single-problem path (exact module semantics) ---
    ref = _reference_forward(yl, yh, m0, m1)
    res = jax.block_until_ready(mapping_connection_forward(yl, yh, m0, m1))
    assert res.shape == yh_shape
    assert jnp.allclose(res, ref, atol=3e-5, rtol=1e-4), "single-problem mismatch"

    # --- batched path: B=4 problems, one grid step ---
    B = 4
    yl_b = jax.random.normal(k3, (B,) + yl_shape, dtype=jnp.float32)
    yh_b = jax.random.normal(k4, (B,) + yh_shape, dtype=jnp.float32)
    ref_b = jax.vmap(lambda a, b: _reference_forward(a, b, m0, m1))(yl_b, yh_b)
    res_b = jax.block_until_ready(
        mapping_connection_forward_batched(yl_b, yh_b, m0, m1))
    assert res_b.shape == (B,) + yh_shape
    assert jnp.allclose(res_b, ref_b, atol=3e-5, rtol=1e-4), "batched mismatch"

    # --- batched path with batch tiling + padding: B=20, Bt=8 -> grid of 3 ---
    B2 = 20
    yl_b2 = jax.random.normal(k5, (B2,) + yl_shape, dtype=jnp.float32)
    yh_b2 = jax.random.normal(k6, (B2,) + yh_shape, dtype=jnp.float32)
    ref_b2 = jax.vmap(lambda a, b: _reference_forward(a, b, m0, m1))(yl_b2, yh_b2)
    res_b2 = jax.block_until_ready(
        mapping_connection_forward_batched(yl_b2, yh_b2, m0, m1, block_b=8))
    assert res_b2.shape == (B2,) + yh_shape
    assert jnp.allclose(res_b2, ref_b2, atol=3e-5, rtol=1e-4), "tiled batched mismatch"

    # --- bf16 MXU path (pre-cast W once in the wrapper), looser tolerance ---
    res_bf16 = jax.block_until_ready(
        mapping_connection_forward_batched(yl_b, yh_b, m0, m1,
                                           mxu_dtype=jnp.bfloat16))
    assert jnp.allclose(res_bf16, ref_b, atol=5e-2, rtol=5e-2), "bf16 mismatch"

    print("KERNEL_OK")
</pallas_src>

<mosaic_0001>
module attributes {stable_mosaic.version = 11 : i64} {
  func.func @_mapping_connection_kernel(%arg0: i32, %arg1: memref<1x128xf32, #tpu.memory_space<vmem>>, %arg2: memref<128x512xf32, #tpu.memory_space<vmem>>, %arg3: memref<1x512xf32, #tpu.memory_space<vmem>>, %arg4: memref<1x512xf32, #tpu.memory_space<vmem>>) attributes {dimension_semantics = [#tpu.dimension_semantics<parallel>], iteration_bounds = array<i64: 1>, scalar_prefetch = 0 : i64, scratch_operands = 0 : i64, tpu.core_type = #tpu.core_type<tc>, window_params = [{transform_indices = @transform_0, window_bounds = array<i64: 1, 128>}, {pipeline_mode = #tpu.pipeline_mode<synchronous>, transform_indices = @transform_1, window_bounds = array<i64: 128, 512>}, {transform_indices = @transform_2, window_bounds = array<i64: 1, 512>}, {transform_indices = @transform_3, window_bounds = array<i64: 1, 512>}]} {
    %c0 = arith.constant 0 : index
    %c0_0 = arith.constant 0 : index
    %0 = vector.load %arg1[%c0, %c0_0] : memref<1x128xf32, #tpu.memory_space<vmem>>, vector<1x128xf32>
    %c0_1 = arith.constant 0 : index
    %c0_2 = arith.constant 0 : index
    %1 = vector.load %arg2[%c0_1, %c0_2] : memref<128x512xf32, #tpu.memory_space<vmem>>, vector<128x512xf32>
    %cst = arith.constant dense<0.000000e+00> : vector<1x512xf32>
    %2 = tpu.matmul %0, %1, %cst {dimension_numbers = #tpu.dot_dimension_numbers<[1], [0], [0], [1], [0, 0, 1, 1], [], []>} : vector<1x128xf32>, vector<128x512xf32>, vector<1x512xf32> -> vector<1x512xf32>
    %c0_3 = arith.constant 0 : index
    %c0_4 = arith.constant 0 : index
    %3 = vector.load %arg3[%c0_3, %c0_4] : memref<1x512xf32, #tpu.memory_space<vmem>>, vector<1x512xf32>
    %4 = arith.subf %3, %2 : vector<1x512xf32>
    %c0_5 = arith.constant 0 : index
    %c0_6 = arith.constant 0 : index
    %5 = vector.load %arg4[%c0_5, %c0_6] : memref<1x512xf32, #tpu.memory_space<vmem>>, vector<1x512xf32>
    tpu.vector_store %arg4[%c0_5, %c0_6], %4 {strides = array<i32>} : memref<1x512xf32, #tpu.memory_space<vmem>>, vector<1x512xf32>,
    return
  }
  func.func @transform_0(%arg0: i32) -> (i32, i32) {
    %c0_i32 = arith.constant 0 : i32
    %c0_i32_0 = arith.constant 0 : i32
    return %arg0, %c0_i32 : i32, i32
  }
  func.func @transform_1(%arg0: i32) -> (i32, i32) {
    %c0_i32 = arith.constant 0 : i32
    %c0_i32_0 = arith.constant 0 : i32
    %c0_i32_1 = arith.constant 0 : i32
    return %c0_i32, %c0_i32_0 : i32, i32
  }
  func.func @transform_2(%arg0: i32) -> (i32, i32) {
    %c0_i32 = arith.constant 0 : i32
    %c0_i32_0 = arith.constant 0 : i32
    return %arg0, %c0_i32 : i32, i32
  }
  func.func @transform_3(%arg0: i32) -> (i32, i32) {
    %c0_i32 = arith.constant 0 : i32
    %c0_i32_0 = arith.constant 0 : i32
    return %arg0, %c0_i32 : i32, i32
  }
}

</mosaic_0001>

<bundles_post_ra>
// kernel: tpu_custom_call.1
= control target key start
LH: loop header
LB: loop body
LE: loop exit
PB: predicated region body
PF: predicated region fallthrough
CT: control target
= control target key end

     0   :  { %8 = vsyncpa [#allocation3], 0  ;;  %s349_s0 = inlined_call_operand.vmem [shape: f32[1,128], index: 0, kind: input, shape index: {}]   ;;  %s350_s1 = inlined_call_operand.hbm [shape: f32[128,512], index: 1, kind: input, shape index: {}]   ;;  %s351_s2 = inlined_call_operand.hbm [shape: f32[1,512], index: 2, kind: input, shape index: {}, may-alias: {2,3}]   ;;  %s352_s3 = inlined_call_operand.hbm [shape: f32[1,512], index: 3, kind: output, shape index: {}, may-alias: {2,3}]  }
   0x1   :  { %9 = vsyncpa [#allocation6], 0 }
   0x2   :  { %10 = vsyncpa [#allocation4], 0  ;;  %s17_s14 = sshll.u32 %s350_s1, 4  ;;  %s312_s15 = smov [#allocation2]   ;;  %s18_s14 = int_to_ptr.hbm [resolvable:$true] %s17_s14 }
   0x3   :  { %s19_s16 = sshll.u32 %s312_s15, 4  ;;  %s31_s19 = sshll.u32 %s351_s2, 4  ;;  %s20_s16 = int_to_ptr.vmem [resolvable:$true] %s19_s16  ;;  %s32_s19 = int_to_ptr.hbm [resolvable:$true] %s31_s19 }
   0x4   :  { %s313_s20 = smov 512   ;;  %s314_s21 = smov 32  }
   0x5   :  { %25 = dma.hbm_to_vmem [thread:$0]  %s18_s14, 8192, %s20_s16, [#allocation3], %s313_s20, %s313_s20, %s314_s21  }
   0x6   :  { %s315_s22 = smov [#allocation5]  }
   0x7   :  { %s33_s23 = sshll.u32 %s315_s22, 4  ;;  %s34_s23 = int_to_ptr.vmem [resolvable:$true] %s33_s23 }
   0x8   :  { %36 = dma.hbm_to_vmem [thread:$0]  %s32_s19, 64, %s34_s23, [#allocation6]  }
   0x9   :  { %306 = dma.done.wait [#allocation3], 8192  }
   0xa   :  { %307 = vsyncadd [#allocation3], 4294959104 }
   0xb   :  { %308 = dma.done.wait [#allocation6], 64  }
   0xc   :  { %309 = vsyncadd [#allocation6], 4294967232  ;;  %v108_v0 = vld [vmem:[#allocation2 + $0x1f0] sm:$0xff]  ;;  %v109_v1 = vld [vmem:[#allocation2 + $0x1f8] sm:$0xff]  ;;  %vm198_vm0 = vcmask 1040384   ;;  %vm200_vm1 = vcmask 1042434  }
   0xd   :  { %v104_v2 = vld [vmem:[#allocation2 + $0x1d0] sm:$0xff]  ;;  %150 = vmatpush.msra.mxu2 %v108_v0  ;;  %170 = vmatpush.msra.mxu3 %v109_v1  ;;  %v105_v3 = vld [vmem:[#allocation2 + $0x1d8] sm:$0xff]  ;;  %v107_v6 = vld [vmem:[#allocation2 + $0x1e8] sm:$0xff]  ;;  %vm202_vm2 = vcmask 1041408   ;;  %s218_s27 = sshll.u32 %s352_s3, 4  ;;  %s219_s27 = int_to_ptr.hbm [resolvable:$true] %s218_s27 }
   0xe   :  { %v100_v4 = vld [vmem:[#allocation2 + $0x1b0] sm:$0xff]  ;;  %v101_v5 = vld [vmem:[#allocation2 + $0x1b8] sm:$0xff]  ;;  %v106_v7 = vld [vmem:[#allocation2 + $0x1e0] sm:$0xff]  ;;  %130 = vmatpush.msra.mxu1 %v107_v6  ;;  %v206_v6 = vlaneseq }
   0xf   :  { %151 = vmatpush.msra.mxu2 %v104_v2  ;;  %171 = vmatpush.msra.mxu3 %v105_v3  ;;  %v103_v8 = vld [vmem:[#allocation2 + $0x1c8] sm:$0xff]  ;;  %v96_v9 = vld [vmem:[#allocation2 + $0x190] sm:$0xff]  ;;  %v97_v10 = vld [vmem:[#allocation2 + $0x198] sm:$0xff] }
  0x10   :  { %110 = vmatpush.msra.mxu0 %v106_v7  ;;  %v102_v11 = vld [vmem:[#allocation2 + $0x1c0] sm:$0xff]  ;;  %v99_v12 = vld [vmem:[#allocation2 + $0x1a8] sm:$0xff]  ;;  %131 = vmatpush.msra.mxu1 %v103_v8  ;;  %v92_v14 = vld [vmem:[#allocation2 + $0x170] sm:$0xff]  ;;  %vm208_vm3 = vcmp.lt.s32.totalorder %v206_v6, 512 }
  0x11   :  { %152 = vmatpush.msra.mxu2 %v100_v4  ;;  %172 = vmatpush.msra.mxu3 %v101_v5  ;;  %v98_v13 = vld [vmem:[#allocation2 + $0x1a0] sm:$0xff]  ;;  %v93_v15 = vld [vmem:[#allocation2 + $0x178] sm:$0xff]  ;;  %v95_v16 = vld [vmem:[#allocation2 + $0x188] sm:$0xff] }
  0x12   :  { %111 = vmatpush.msra.mxu0 %v102_v11  ;;  %v94_v17 = vld [vmem:[#allocation2 + $0x180] sm:$0xff]  ;;  %132 = vmatpush.msra.mxu1 %v99_v12  ;;  %v88_v18 = vld [vmem:[#allocation2 + $0x150] sm:$0xff]  ;;  %v89_v19 = vld [vmem:[#allocation2 + $0x158] sm:$0xff] }
  0x13   :  { %153 = vmatpush.msra.mxu2 %v96_v9  ;;  %173 = vmatpush.msra.mxu3 %v97_v10  ;;  %v91_v20 = vld [vmem:[#allocation2 + $0x168] sm:$0xff]  ;;  %v90_v21 = vld [vmem:[#allocation2 + $0x160] sm:$0xff]  ;;  %v84_v22 = vld [vmem:[#allocation2 + $0x130] sm:$0xff] }
  0x14   :  { %112 = vmatpush.msra.mxu0 %v98_v13  ;;  %133 = vmatpush.msra.mxu1 %v95_v16  ;;  %v85_v23 = vld [vmem:[#allocation2 + $0x138] sm:$0xff]  ;;  %v87_v24 = vld [vmem:[#allocation2 + $0x148] sm:$0xff]  ;;  %v86_v25 = vld [vmem:[#allocation2 + $0x140] sm:$0xff] }
  0x15   :  { %154 = vmatpush.msra.mxu2 %v92_v14  ;;  %174 = vmatpush.msra.mxu3 %v93_v15  ;;  %v80_v26 = vld [vmem:[#allocation2 + $0x110] sm:$0xff]  ;;  %v81_v27 = vld [vmem:[#allocation2 + $0x118] sm:$0xff]  ;;  %v83_v28 = vld [vmem:[#allocation2 + $0x128] sm:$0xff] }
  0x16   :  { %113 = vmatpush.msra.mxu0 %v94_v17  ;;  %134 = vmatpush.msra.mxu1 %v91_v20  ;;  %v82_v29 = vld [vmem:[#allocation2 + $0x120] sm:$0xff]  ;;  %v76_v30 = vld [vmem:[#allocation2 + $0xf0] sm:$0xff]  ;;  %v77_v31 = vld [vmem:[#allocation2 + $0xf8] sm:$0xff] }
  0x17   :  { %155 = vmatpush.msra.mxu2 %v88_v18  ;;  %175 = vmatpush.msra.mxu3 %v89_v19  ;;  %v79_v32 = vld [vmem:[#allocation2 + $0x108] sm:$0xff]  ;;  %v78_v33 = vld [vmem:[#allocation2 + $0x100] sm:$0xff]  ;;  %v72_v34 = vld [vmem:[#allocation2 + $0xd0] sm:$0xff] }
  0x18   :  { %114 = vmatpush.msra.mxu0 %v90_v21  ;;  %135 = vmatpush.msra.mxu1 %v87_v24  ;;  %v73_v35 = vld [vmem:[#allocation2 + $0xd8] sm:$0xff]  ;;  %v75_v36 = vld [vmem:[#allocation2 + $0xe8] sm:$0xff]  ;;  %v74_v37 = vld [vmem:[#allocation2 + $0xe0] sm:$0xff] }
  0x19   :  { %156 = vmatpush.msra.mxu2 %v84_v22  ;;  %176 = vmatpush.msra.mxu3 %v85_v23  ;;  %v68_v38 = vld [vmem:[#allocation2 + $0xb0] sm:$0xff]  ;;  %v69_v39 = vld [vmem:[#allocation2 + $0xb8] sm:$0xff]  ;;  %v71_v40 = vld [vmem:[#allocation2 + $0xc8] sm:$0xff] }
  0x1a   :  { %115 = vmatpush.msra.mxu0 %v86_v25  ;;  %136 = vmatpush.msra.mxu1 %v83_v28  ;;  %v70_v41 = vld [vmem:[#allocation2 + $0xc0] sm:$0xff]  ;;  %v64_v42 = vld [vmem:[#allocation2 + $0x90] sm:$0xff]  ;;  %v65_v43 = vld [vmem:[#allocation2 + $0x98] sm:$0xff] }
  0x1b   :  { %157 = vmatpush.msra.mxu2 %v80_v26  ;;  %177 = vmatpush.msra.mxu3 %v81_v27  ;;  %v67_v44 = vld [vmem:[#allocation2 + $0xa8] sm:$0xff]  ;;  %v66_v45 = vld [vmem:[#allocation2 + $0xa0] sm:$0xff]  ;;  %v60_v46 = vld [vmem:[#allocation2 + $0x70] sm:$0xff] }
  0x1c   :  { %116 = vmatpush.msra.mxu0 %v82_v29  ;;  %137 = vmatpush.msra.mxu1 %v79_v32  ;;  %v61_v47 = vld [vmem:[#allocation2 + $0x78] sm:$0xff]  ;;  %v63_v48 = vld [vmem:[#allocation2 + $0x88] sm:$0xff]  ;;  %v62_v49 = vld [vmem:[#allocation2 + $0x80] sm:$0xff] }
  0x1d   :  { %158 = vmatpush.msra.mxu2 %v76_v30  ;;  %178 = vmatpush.msra.mxu3 %v77_v31  ;;  %v56_v50 = vld [vmem:[#allocation2 + $0x50] sm:$0xff]  ;;  %v57_v51 = vld [vmem:[#allocation2 + $0x58] sm:$0xff]  ;;  %v59_v52 = vld [vmem:[#allocation2 + $0x68] sm:$0xff] }
  0x1e   :  { %117 = vmatpush.msra.mxu0 %v78_v33  ;;  %138 = vmatpush.msra.mxu1 %v75_v36  ;;  %v58_v53 = vld [vmem:[#allocation2 + $0x60] sm:$0xff]  ;;  %v52_v54 = vld [vmem:[#allocation2 + $0x30] sm:$0xff]  ;;  %v53_v55 = vld [vmem:[#allocation2 + $0x38] sm:$0xff] }
  0x1f   :  { %159 = vmatpush.msra.mxu2 %v72_v34  ;;  %179 = vmatpush.msra.mxu3 %v73_v35  ;;  %v55_v56 = vld [vmem:[#allocation2 + $0x48] sm:$0xff]  ;;  %v54_v57 = vld [vmem:[#allocation2 + $0x40] sm:$0xff]  ;;  %v48_v58 = vld [vmem:[#allocation2 + $0x10] sm:$0xff] }
  0x20   :  { %118 = vmatpush.msra.mxu0 %v74_v37  ;;  %139 = vmatpush.msra.mxu1 %v71_v40  ;;  %v49_v59 = vld [vmem:[#allocation2 + $0x18] sm:$0xff]  ;;  %v45_v60 = vld [vmem:[%s349_s0] sm:$0x1]  ;;  %v51_v61 = vld [vmem:[#allocation2 + $0x28] sm:$0xff]  ;;  %s316_s0 = smov [#allocation7]  }
  0x21   :  { %160 = vmatpush.msra.mxu2 %v68_v38  ;;  %180 = vmatpush.msra.mxu3 %v69_v39  ;;  %v50_v62 = vld [vmem:[#allocation2 + $0x20] sm:$0xff]  ;;  %v47_v63 = vld [vmem:[#allocation2 + $0x8] sm:$0xff]  ;;  %s216_s24 = sshll.u32 %s316_s0, 4  ;;  %s217_s24 = int_to_ptr.vmem [resolvable:$true] %s216_s24 }
  0x22   :  { %119 = vmatpush.msra.mxu0 %v70_v41  ;;  %140 = vmatpush.msra.mxu1 %v67_v44  ;;  %v46_v0 = vld [vmem:[#allocation2] sm:$0xff] }
  0x23   :  { %161 = vmatpush.msra.mxu2 %v64_v42  ;;  %181 = vmatpush.msra.mxu3 %v65_v43  ;;  %v190_v10 = vld [vmem:[#allocation5] sm:$0xf] }
  0x24   :  { %120 = vmatpush.msra.mxu0 %v66_v45  ;;  %141 = vmatpush.msra.mxu1 %v63_v48 }
  0x25   :  { %162 = vmatpush.msra.mxu2 %v60_v46  ;;  %182 = vmatpush.msra.mxu3 %v61_v47 }
  0x26   :  { %121 = vmatpush.msra.mxu0 %v62_v49  ;;  %142 = vmatpush.msra.mxu1 %v59_v52 }
  0x27   :  { %163 = vmatpush.msra.mxu2 %v56_v50  ;;  %183 = vmatpush.msra.mxu3 %v57_v51 }
  0x28   :  { %122 = vmatpush.msra.mxu0 %v58_v53  ;;  %143 = vmatpush.msra.mxu1 %v55_v56 }
  0x29   :  { %164 = vmatpush.msra.mxu2 %v52_v54  ;;  %184 = vmatpush.msra.mxu3 %v53_v55 }
  0x2a   :  { %123 = vmatpush.msra.mxu0 %v54_v57  ;;  %144 = vmatpush.msra.mxu1 %v51_v61 }
  0x2b   :  { %165 = vmatpush.msra.mxu2 %v48_v58  ;;  %185 = vmatpush.msra.mxu3 %v49_v59 }
  0x2c   :  { %166 = vmatmul.f32.vlgmr.msra.gmra.mxu2 %v45_v60  ;;  %186 = vmatmul.f32.vlgmr.msra.gmra.mxu3 %v45_v60 }
  0x2d   :  { %124 = vmatpush.msra.mxu0 %v50_v62  ;;  %145 = vmatpush.msra.mxu1 %v47_v63 }
  0x2e   :  { %146 = vmatmul.f32.vlgmr.msra.gmra.mxu1 %v45_v60 }
  0x2f   :  { %125 = vmatpush.msra.mxu0 %v46_v0 }
  0x30   :  { %126 = vmatmul.f32.vlgmr.msra.gmra.mxu0 %v45_v60 }
  0xab   :  { %v147_v1 = vpop.f32.mrf.mxu1 }
  0xac   :  { %v195_v3 = vrot.slane %v147_v1, 7 }
  0xad   :  { %v127_v2 = vpop.f32.mrf.mxu0 }
  0xae   :  { %v199_v9 = vsel %vm198_vm0, %v127_v2, %v195_v3 }
  0xaf   :  { %v167_v4 = vpop.f32.mrf.mxu2  ;;  %v187_v5 = vpop.f32.mrf.mxu3 }
  0xb0   :  { %v196_v7 = vrot.slane %v167_v4, 6  ;;  %v197_v8 = vrot.slane %v187_v5, 5 }
  0xb2   :  { %v201_v11 = vsel %vm200_vm1, %v196_v7, %v197_v8 }
  0xb3   :  { %v203_v12 = vsel %vm202_vm2, %v199_v9, %v201_v11 }
  0xb4   :  { %v205_v13 = vsub.f32 %v190_v10, %v203_v12 }
  0xb6   :  { %210 = vst.msk [vmem:[#allocation7] sm:$0xf] %vm208_vm3, %v205_v13 }
  0xb7   :  { %221 = dma.vmem_to_hbm [thread:$0]  %s217_s24, 64, %s219_s27, [#allocation4]  }
  0xb8   :  { %310 = dma.done.wait [#allocation4], 64  }
  0xb9   :  { %311 = vsyncadd [#allocation4], 4294967232 }
  0xba   :  { %226 = vsyncpa [#allocation3], 1 }
  0xbb   :  { %227 = vsyncpa [#allocation6], 1 }
  0xbc   :  { %228 = vsyncpa [#allocation4], 1 }

</bundles_post_ra>
